<compile_context>
chip_gen: v7x
topology: tpu7x:2x2x1
jax: 0.10.0
libtpu: 0.0.40
codegen_flags: <defaults>
</compile_context>

<pallas_src>
import jax
import jax.numpy as jnp
from jax.experimental import pallas as pl
from jax.experimental.pallas import tpu as pltpu

_LANE = 128
_SUBLANE = 8


def _round_up(n, m):
    return ((n + m - 1) // m) * m


def _max_tile_rows():
    """Row-tile cap by TPU generation."""
    try:
        kind = jax.devices()[0].device_kind.lower()
    except Exception:
        return 512
    if "v7" in kind:
        return 512   # 64 MiB VMEM / 2 TCs: smaller tiles, keep several grid steps
    return 1024      # v5e/v6e: 128 MiB VMEM, single TC: bigger tiles amortize per-step cost


def _clamp_tm_for_vmem(tm, packdim, flat):
    """Keep (double-buffered f32 x tile + resident params + temps) under the smallest
    default scoped-VMEM limit across generations (v5e: 16 MiB)."""
    budget = 12 * 1024 * 1024
    k0 = _round_up(packdim, _LANE)                     # lane-padded x-tile width in VMEM
    widest = max([k0] + [int(a.shape[-1]) for a in flat])
    per_row = 2 * k0 * 4 + widest * 6 + 8              # x (2 bufs, f32) + f32/bf16 temps + out
    resident = 2 * sum(int(a.size) * a.dtype.itemsize for a in flat)  # params (double-buffered)
    avail = max(budget - resident, per_row * _SUBLANE)
    cap = max(_SUBLANE, (avail // per_row) // _SUBLANE * _SUBLANE)
    return max(_SUBLANE, min(tm, cap))


def _make_mlp_kernel(num_hidden):
    """Fused MLP: num_hidden (Linear + LeakyReLU(0.2) [+ Dropout=identity]) + scalar head."""

    def kernel(*refs):
        # refs = (x_ref, w0, b0, ..., w_{H-1}, b_{H-1}, w_head_row, b_head, out_ref)
        x_ref = refs[0]
        out_ref = refs[-1]
        p = refs[1:-1]

        h = x_ref[...].astype(jnp.float32)             # (TM, K0) f32
        for i in range(num_hidden):
            w = p[2 * i][...]                          # bf16 (Kin, Dout_p)
            b = p[2 * i + 1][...]                      # f32  (1, Dout_p)
            z = jnp.dot(h.astype(jnp.bfloat16), w,
                        preferred_element_type=jnp.float32) + b
            h = jnp.maximum(z, 0.2 * z)                # LeakyReLU(0.2), f32 epilogue
            # Dropout(0.5): identity in eval mode.

        w_head = p[-2][...]                            # f32 (1, Dlast_p)
        b_head = p[-1][...]                            # f32 (1, 1)
        # Head Linear(dim, 1) as VPU multiply + XLU lane-reduce; emit a lane-dense
        # (1, TM) row (the transpose of the reduce result goes through the idle XLU).
        row = jnp.sum(h * w_head, axis=-1)[None, :] + b_head        # (1, TM)
        out_ref[...] = row.reshape(out_ref.shape).astype(out_ref.dtype)

    return kernel


def init_discriminator_params(key, input_dim, discriminator_dim, pack):
    """PyTorch-Linear-style init (uniform +/- 1/sqrt(fan_in)).

    Weights returned as (in_features, out_features) f32; biases as (1, out) f32.
    """
    params = []
    dim = input_dim * pack
    for item in list(discriminator_dim) + [1]:
        key, kw, kb = jax.random.split(key, 3)
        bound = 1.0 / float(dim) ** 0.5
        w = jax.random.uniform(kw, (dim, item), jnp.float32, -bound, bound)
        b = jax.random.uniform(kb, (1, item), jnp.float32, -bound, bound)
        params.append((w, b))
        dim = item
    return params


def prepare_discriminator_params(params):
    """One-time lane-padding + casting of the Linear parameters (hoisted out of forward).

    Returns (flat, num_hidden) where
      flat = [w0 bf16 (K0, D0p), b0 f32 (1, D0p), ..., w_head f32 (1, Dlast_p), b_head f32 (1,1)]
    Layer-0 keeps K = packdim exactly (streamed x block is not padded); hidden K/N dims
    are zero-padded to lane multiples (exact: padded lanes stay 0 through LeakyReLU and
    the zeroed head-weight entries).
    """
    num_hidden = len(params) - 1
    flat = []
    prev_out_p = None
    for i in range(num_hidden):
        w, b = params[i]
        din, dout = w.shape
        kin = din if i == 0 else prev_out_p
        dout_p = _round_up(dout, _LANE)
        w_p = jnp.zeros((kin, dout_p), jnp.bfloat16).at[:din, :dout].set(
            jnp.asarray(w, jnp.float32).astype(jnp.bfloat16))
        b_p = jnp.zeros((1, dout_p), jnp.float32).at[:, :dout].set(
            jnp.asarray(b, jnp.float32).reshape(1, -1))
        flat += [w_p, b_p]
        prev_out_p = dout_p

    w_head, b_head = params[-1]
    dlast = w_head.shape[0]
    klast = dlast if num_hidden == 0 else prev_out_p
    w_head_row = jnp.zeros((1, klast), jnp.float32).at[:, :dlast].set(
        jnp.asarray(w_head, jnp.float32).reshape(1, -1))
    b_head_p = jnp.asarray(b_head, jnp.float32).reshape(1, 1)
    flat += [w_head_row, b_head_p]
    return tuple(flat), num_hidden


def discriminator_forward(x, prep, pack):
    """x: (B, input_dim) f32, B % pack == 0.  prep = prepare_discriminator_params(params).
    Returns (B//pack, 1) float32."""
    flat, num_hidden = prep
    B, input_dim = x.shape
    assert B % pack == 0
    rows = B // pack
    packdim = input_dim * pack
    xp = x.reshape(rows, packdim)                    # == input.view(-1, self.packdim)

    # Row tiling: stream f32 x tiles directly (no wrapper pad/cast pass); bf16 cast
    # happens in-kernel.  A partial last tile only produces garbage in rows that are
    # sliced off below.
    if rows <= _SUBLANE:
        tm = rows                                    # full-extent block (legal at any size)
    else:
        tm = min(_max_tile_rows(), (rows // _SUBLANE) * _SUBLANE)
        if rows >= 2 * _SUBLANE:
            # Keep >= 2 grid steps so v7x's two TensorCores both get work
            # (negligible cost on single-core v5e/v6e).
            tm = min(tm, _round_up(pl.cdiv(rows, 2), _SUBLANE))
        tm = _clamp_tm_for_vmem(tm, packdim, flat)
    grid_m = pl.cdiv(rows, tm)

    # x tiles stream over the grid; parameters are VMEM-resident (constant block index).
    in_specs = [pl.BlockSpec((tm, packdim), lambda i: (i, 0))]
    in_specs += [pl.BlockSpec(a.shape, lambda i: (0, 0)) for a in flat]

    # Lane-dense output: one (1, tm) row per grid step (unmasked stores when tm % 128 == 0).
    out = pl.pallas_call(
        _make_mlp_kernel(num_hidden),
        out_shape=jax.ShapeDtypeStruct((grid_m, 1, tm), jnp.float32),
        grid=(grid_m,),
        in_specs=in_specs,
        out_specs=pl.BlockSpec((1, 1, tm), lambda i: (i, 0, 0)),
        compiler_params=pltpu.CompilerParams(
            # Batch axis is embarrassingly parallel -> megacore sharding on v7x.
            dimension_semantics=("parallel",),
        ),
    )(xp, *flat)
    return out.reshape(-1)[:rows].reshape(rows, 1)


def discriminator_forward_ref(x, params, pack):
    """Pure-JAX f32 reference for correctness checking."""
    B, input_dim = x.shape
    h = x.reshape(B // pack, input_dim * pack).astype(jnp.float32)
    for i, (w, b) in enumerate(params):
        h = h @ w + b
        if i < len(params) - 1:
            h = jnp.where(h >= 0.0, h, 0.2 * h)
    return h


if __name__ == "__main__":
    # Test 1: tiny shapes consistent with the module: pack=2, input_dim=16,
    # discriminator_dim=(32, 32), batch=8 (divisible by pack) -> single-tile path.
    input_dim = 16
    pack = 2
    discriminator_dim = (32, 32)
    batch = 8

    key = jax.random.PRNGKey(0)
    key, kx = jax.random.split(key)
    x = jax.random.normal(kx, (batch, input_dim), dtype=jnp.float32)

    params = init_discriminator_params(key, input_dim, discriminator_dim, pack)
    prep = prepare_discriminator_params(params)      # one-time pad/cast, hoisted out of forward

    out = discriminator_forward(x, prep, pack)
    out = jax.block_until_ready(out)

    ref = discriminator_forward_ref(x, params, pack)
    assert out.shape == (batch // pack, 1), out.shape
    # bf16 matmul operands vs f32 reference -> loose tolerance.
    assert jnp.allclose(out, ref, atol=5e-2, rtol=5e-2), (out, ref)

    # Test 2: multi-tile grid with a partial last tile and non-lane-aligned packdim.
    input_dim2, pack2, batch2 = 20, 4, 100           # rows=25, packdim=80
    discriminator_dim2 = (64, 64)
    key, kx2 = jax.random.split(key)
    x2 = jax.random.normal(kx2, (batch2, input_dim2), dtype=jnp.float32)
    params2 = init_discriminator_params(key, input_dim2, discriminator_dim2, pack2)
    prep2 = prepare_discriminator_params(params2)

    out2 = jax.block_until_ready(discriminator_forward(x2, prep2, pack2))
    ref2 = discriminator_forward_ref(x2, params2, pack2)
    assert out2.shape == (batch2 // pack2, 1), out2.shape
    assert jnp.allclose(out2, ref2, atol=5e-2, rtol=5e-2), (out2, ref2)

    print("KERNEL_OK")
</pallas_src>

<mosaic_0001>
module attributes {stable_mosaic.version = 11 : i64} {
  func.func @kernel(%arg0: i32, %arg1: memref<4x32xf32, #tpu.memory_space<vmem>>, %arg2: memref<32x128xbf16, #tpu.memory_space<vmem>>, %arg3: memref<1x128xf32, #tpu.memory_space<vmem>>, %arg4: memref<128x128xbf16, #tpu.memory_space<vmem>>, %arg5: memref<1x128xf32, #tpu.memory_space<vmem>>, %arg6: memref<1x128xf32, #tpu.memory_space<vmem>>, %arg7: memref<1x1xf32, #tpu.memory_space<vmem>>, %arg8: memref<1x1x4xf32, #tpu.memory_space<vmem>>) attributes {dimension_semantics = [#tpu.dimension_semantics<parallel>], iteration_bounds = array<i64: 1>, scalar_prefetch = 0 : i64, scratch_operands = 0 : i64, tpu.core_type = #tpu.core_type<tc>, window_params = [{transform_indices = @transform_0, window_bounds = array<i64: 4, 32>}, {pipeline_mode = #tpu.pipeline_mode<synchronous>, transform_indices = @transform_1, window_bounds = array<i64: 32, 128>}, {pipeline_mode = #tpu.pipeline_mode<synchronous>, transform_indices = @transform_2, window_bounds = array<i64: 1, 128>}, {pipeline_mode = #tpu.pipeline_mode<synchronous>, transform_indices = @transform_3, window_bounds = array<i64: 128, 128>}, {pipeline_mode = #tpu.pipeline_mode<synchronous>, transform_indices = @transform_4, window_bounds = array<i64: 1, 128>}, {pipeline_mode = #tpu.pipeline_mode<synchronous>, transform_indices = @transform_5, window_bounds = array<i64: 1, 128>}, {pipeline_mode = #tpu.pipeline_mode<synchronous>, transform_indices = @transform_6, window_bounds = array<i64: 1, 1>}, {transform_indices = @transform_7, window_bounds = array<i64: 1, 1, 4>}]} {
    %c0 = arith.constant 0 : index
    %c0_0 = arith.constant 0 : index
    %0 = vector.load %arg1[%c0, %c0_0] : memref<4x32xf32, #tpu.memory_space<vmem>>, vector<4x32xf32>
    %c0_1 = arith.constant 0 : index
    %c0_2 = arith.constant 0 : index
    %1 = vector.load %arg2[%c0_1, %c0_2] : memref<32x128xbf16, #tpu.memory_space<vmem>>, vector<32x128xbf16>
    %c0_3 = arith.constant 0 : index
    %c0_4 = arith.constant 0 : index
    %2 = vector.load %arg3[%c0_3, %c0_4] : memref<1x128xf32, #tpu.memory_space<vmem>>, vector<1x128xf32>
    %3 = arith.truncf %0 : vector<4x32xf32> to vector<4x32xbf16>
    %cst = arith.constant dense<0.000000e+00> : vector<4x128xf32>
    %4 = tpu.matmul %3, %1, %cst {dimension_numbers = #tpu.dot_dimension_numbers<[1], [0], [0], [1], [0, 0, 1, 1], [], []>} : vector<4x32xbf16>, vector<32x128xbf16>, vector<4x128xf32> -> vector<4x128xf32>
    %5 = vector.broadcast %2 : vector<1x128xf32> to vector<4x128xf32>
    %6 = arith.addf %4, %5 : vector<4x128xf32>
    %cst_5 = arith.constant 2.000000e-01 : f32
    %7 = vector.broadcast %cst_5 : f32 to vector<4x128xf32>
    %8 = arith.mulf %7, %6 : vector<4x128xf32>
    %9 = arith.maximumf %6, %8 : vector<4x128xf32>
    %c0_6 = arith.constant 0 : index
    %c0_7 = arith.constant 0 : index
    %10 = vector.load %arg4[%c0_6, %c0_7] : memref<128x128xbf16, #tpu.memory_space<vmem>>, vector<128x128xbf16>
    %c0_8 = arith.constant 0 : index
    %c0_9 = arith.constant 0 : index
    %11 = vector.load %arg5[%c0_8, %c0_9] : memref<1x128xf32, #tpu.memory_space<vmem>>, vector<1x128xf32>
    %12 = arith.truncf %9 : vector<4x128xf32> to vector<4x128xbf16>
    %cst_10 = arith.constant dense<0.000000e+00> : vector<4x128xf32>
    %13 = tpu.matmul %12, %10, %cst_10 {dimension_numbers = #tpu.dot_dimension_numbers<[1], [0], [0], [1], [0, 0, 1, 1], [], []>} : vector<4x128xbf16>, vector<128x128xbf16>, vector<4x128xf32> -> vector<4x128xf32>
    %14 = vector.broadcast %11 : vector<1x128xf32> to vector<4x128xf32>
    %15 = arith.addf %13, %14 : vector<4x128xf32>
    %cst_11 = arith.constant 2.000000e-01 : f32
    %16 = vector.broadcast %cst_11 : f32 to vector<4x128xf32>
    %17 = arith.mulf %16, %15 : vector<4x128xf32>
    %18 = arith.maximumf %15, %17 : vector<4x128xf32>
    %c0_12 = arith.constant 0 : index
    %c0_13 = arith.constant 0 : index
    %19 = vector.load %arg6[%c0_12, %c0_13] : memref<1x128xf32, #tpu.memory_space<vmem>>, vector<1x128xf32>
    %c0_14 = arith.constant 0 : index
    %c0_15 = arith.constant 0 : index
    %20 = vector.load %arg7[%c0_14, %c0_15] : memref<1x1xf32, #tpu.memory_space<vmem>>, vector<1x1xf32>
    %21 = vector.broadcast %19 : vector<1x128xf32> to vector<4x128xf32>
    %22 = arith.mulf %18, %21 : vector<4x128xf32>
    %cst_16 = arith.constant dense<0.000000e+00> : vector<4xf32>
    %23 = vector.multi_reduction <add>, %22, %cst_16 [1] : vector<4x128xf32> to vector<4xf32>
    %24 = vector.shape_cast %23 : vector<4xf32> to vector<1x4xf32>
    %25 = vector.broadcast %20 : vector<1x1xf32> to vector<1x4xf32>
    %26 = arith.addf %24, %25 : vector<1x4xf32>
    %27 = vector.shape_cast %26 : vector<1x4xf32> to vector<1x1x4xf32>
    %c0_17 = arith.constant 0 : index
    %c0_18 = arith.constant 0 : index
    %c0_19 = arith.constant 0 : index
    %28 = vector.load %arg8[%c0_17, %c0_18, %c0_19] : memref<1x1x4xf32, #tpu.memory_space<vmem>>, vector<1x1x4xf32>
    tpu.vector_store %arg8[%c0_17, %c0_18, %c0_19], %27 {strides = array<i32>} : memref<1x1x4xf32, #tpu.memory_space<vmem>>, vector<1x1x4xf32>,
    return
  }
  func.func @transform_0(%arg0: i32) -> (i32, i32) {
    %c0_i32 = arith.constant 0 : i32
    %c0_i32_0 = arith.constant 0 : i32
    return %arg0, %c0_i32 : i32, i32
  }
  func.func @transform_1(%arg0: i32) -> (i32, i32) {
    %c0_i32 = arith.constant 0 : i32
    %c0_i32_0 = arith.constant 0 : i32
    %c0_i32_1 = arith.constant 0 : i32
    return %c0_i32, %c0_i32_0 : i32, i32
  }
  func.func @transform_2(%arg0: i32) -> (i32, i32) {
    %c0_i32 = arith.constant 0 : i32
    %c0_i32_0 = arith.constant 0 : i32
    %c0_i32_1 = arith.constant 0 : i32
    return %c0_i32, %c0_i32_0 : i32, i32
  }
  func.func @transform_3(%arg0: i32) -> (i32, i32) {
    %c0_i32 = arith.constant 0 : i32
    %c0_i32_0 = arith.constant 0 : i32
    %c0_i32_1 = arith.constant 0 : i32
    return %c0_i32, %c0_i32_0 : i32, i32
  }
  func.func @transform_4(%arg0: i32) -> (i32, i32) {
    %c0_i32 = arith.constant 0 : i32
    %c0_i32_0 = arith.constant 0 : i32
    %c0_i32_1 = arith.constant 0 : i32
    return %c0_i32, %c0_i32_0 : i32, i32
  }
  func.func @transform_5(%arg0: i32) -> (i32, i32) {
    %c0_i32 = arith.constant 0 : i32
    %c0_i32_0 = arith.constant 0 : i32
    %c0_i32_1 = arith.constant 0 : i32
    return %c0_i32, %c0_i32_0 : i32, i32
  }
  func.func @transform_6(%arg0: i32) -> (i32, i32) {
    %c0_i32 = arith.constant 0 : i32
    %c0_i32_0 = arith.constant 0 : i32
    %c0_i32_1 = arith.constant 0 : i32
    return %c0_i32, %c0_i32_0 : i32, i32
  }
  func.func @transform_7(%arg0: i32) -> (i32, i32, i32) {
    %c0_i32 = arith.constant 0 : i32
    %c0_i32_0 = arith.constant 0 : i32
    %c0_i32_1 = arith.constant 0 : i32
    return %arg0, %c0_i32, %c0_i32_0 : i32, i32, i32
  }
}

</mosaic_0001>

<bundles_post_ra>
// kernel: tpu_custom_call.1
= control target key start
LH: loop header
LB: loop body
LE: loop exit
PB: predicated region body
PF: predicated region fallthrough
CT: control target
= control target key end

     0   :  { %s586_s0 = inlined_call_operand.hbm [shape: f32[4,32], index: 0, kind: input, shape index: {}]   ;;  %s587_s1 = inlined_call_operand.hbm [shape: bf16[32,128], index: 1, kind: input, shape index: {}]   ;;  %s588_s2 = inlined_call_operand.vmem [shape: f32[1,128], index: 2, kind: input, shape index: {}]   ;;  %s589_s3 = inlined_call_operand.hbm [shape: bf16[128,128], index: 3, kind: input, shape index: {}]   ;;  %s590_s4 = inlined_call_operand.vmem [shape: f32[1,128], index: 4, kind: input, shape index: {}]   ;;  %s591_s5 = inlined_call_operand.vmem [shape: f32[1,128], index: 5, kind: input, shape index: {}]   ;;  %s592_s6 = inlined_call_operand.<no memory space> [shape: f32[1,1], index: 6, kind: input, shape index: {}]   ;;  %s593_s7 = inlined_call_operand.hbm [shape: f32[1,1,4], index: 7, kind: output, shape index: {}]  }
   0x1   :  { %v12_v0 = vstv %s592_s6 }
   0x2   :  { %13 = vst [vmem:[#allocation2] sm:$0x1] %v12_v0 }
   0x3   :  { %14 = vsyncpa [#allocation4], 0 }
   0x4   :  { %15 = vsyncpa [#allocation7], 0 }
   0x5   :  { %16 = vsyncpa [#allocation5], 0  ;;  %s471_s26 = smov [#allocation6]   ;;  %s377_s30 = scalar_lea.hbm %s587_s1, 256 }
   0x6   :  { %s32_s27 = sshll.u32 %s471_s26, 4  ;;  %p378_p0 = scmp.ne.s32.totalorder %s587_s1, %s377_s30  ;;  %s33_s27 = int_to_ptr.vmem [resolvable:$true] %s32_s27 }
   0x7   :  { %p381_p1 = scmp.lt.u32.totalorder %s377_s30, %s587_s1 }
   0x9   :  { %p383_p2 = pnand %p381_p1, %p378_p0 }
   0xb   :  { %386 = shalt.err (!%p383_p2)
}
   0xc   :  { %s387_s6 = scalar_lea.vmem %s33_s27, 256  ;;  %p392_p4 = scmp.lt.s32.totalorder %s33_s27, %s33_s27 }
   0xd   :  { %p388_p3 = scmp.ne.s32.totalorder %s33_s27, %s387_s6  ;;  %p393_p5 = scmp.lt.s32.totalorder %s387_s6, %s387_s6 }
   0xf   :  { %p394_p6 = por %p393_p5, %p392_p4 }
  0x11   :  { %p395_p7 = pnand %p394_p6, %p388_p3 }
  0x13   :  { %398 = shalt.err (!%p395_p7)
}
  0x14   :  { %s472_s12 = smov 64   ;;  %s473_s13 = smov 4  }
  0x15   :  { %38 = dma.hbm_to_vmem [thread:$0]  %s587_s1, 256, %s33_s27, [#allocation7], %s472_s12, %s472_s12, %s473_s13  }
  0x16   :  { %s474_s16 = smov [#allocation3]   ;;  %s475_s18 = smov [#allocation8]  }
  0x17   :  { %s23_s17 = sshll.u32 %s474_s16, 4  ;;  %s46_s19 = sshll.u32 %s475_s18, 4  ;;  %s24_s17 = int_to_ptr.vmem [resolvable:$true] %s23_s17  ;;  %s47_s19 = int_to_ptr.vmem [resolvable:$true] %s46_s19 }
  0x18   :  { %s399_s22 = scalar_lea.hbm %s586_s0, 64 }
  0x19   :  { %p400_p8 = scmp.ne.s32.totalorder %s586_s0, %s399_s22  ;;  %p403_p9 = scmp.lt.u32.totalorder %s399_s22, %s586_s0 }
  0x1b   :  { %p405_p10 = pnand %p403_p9, %p400_p8 }
  0x1d   :  { %408 = shalt.err (!%p405_p10)
}
  0x1e   :  { %s409_s1 = scalar_lea.vmem %s24_s17, 64  ;;  %p414_p12 = scmp.lt.s32.totalorder %s24_s17, %s24_s17 }
  0x1f   :  { %p410_p11 = scmp.ne.s32.totalorder %s24_s17, %s409_s1  ;;  %p415_p13 = scmp.lt.s32.totalorder %s409_s1, %s409_s1 }
  0x21   :  { %p416_p0 = por %p415_p13, %p414_p12 }
  0x23   :  { %p417_p1 = pnand %p416_p0, %p410_p11 }
  0x25   :  { %420 = shalt.err (!%p417_p1)
}
  0x26   :  { %26 = dma.hbm_to_vmem [thread:$0]  %s586_s0, 64, %s24_s17, [#allocation4]  }
  0x27   :  { %s421_s8 = scalar_lea.hbm %s589_s3, 1024 }
  0x28   :  { %p422_p2 = scmp.ne.s32.totalorder %s589_s3, %s421_s8  ;;  %p425_p3 = scmp.lt.u32.totalorder %s421_s8, %s589_s3 }
  0x2a   :  { %p427_p4 = pnand %p425_p3, %p422_p2 }
  0x2c   :  { %430 = shalt.err (!%p427_p4)
}
  0x2d   :  { %s431_s14 = scalar_lea.vmem %s47_s19, 1024  ;;  %p436_p6 = scmp.lt.s32.totalorder %s47_s19, %s47_s19 }
  0x2e   :  { %p432_p5 = scmp.ne.s32.totalorder %s47_s19, %s431_s14  ;;  %p437_p7 = scmp.lt.s32.totalorder %s431_s14, %s431_s14 }
  0x30   :  { %p438_p8 = por %p437_p7, %p436_p6 }
  0x32   :  { %p439_p9 = pnand %p438_p8, %p432_p5 }
  0x34   :  { %442 = shalt.err (!%p439_p9)
}
  0x35   :  { %52 = dma.hbm_to_vmem [thread:$0]  %s589_s3, 1024, %s47_s19, [#allocation7], %s472_s12, %s472_s12, %s473_s13  }
  0x36   :  { %465 = dma.done.wait [#allocation4], 64  }
  0x37   :  { %466 = vsyncadd [#allocation4], 4294967232 }
  0x38   :  { %467 = dma.done.wait [#allocation7], 1280  }
  0x39   :  { %468 = vsyncadd [#allocation7], 4294966016  ;;  %v476_v1 = vmov 0.0   ;;  %vm477_vm0 = vmmov 0   ;;  %v367_v2 = vld [vmem:[#allocation6] sm:$0xff]   ;;  %v368_v3 = vld [vmem:[#allocation6 + $0x8] sm:$0xff]   ;;  %v272_v36 = vlaneseq }
  0x3a   :  { %329 = vmatprep.subr.bf16.mxu0 %v476_v1  ;;  %333 = vmatprep.mubr.msk.bf16.mxu0 %vm477_vm0, %v476_v1  ;;  %v69_v4 = vld [vmem:[#allocation3] sm:$0xf]  ;;  %v369_v5 = vld [vmem:[#allocation8] sm:$0xff]   ;;  %vm94_vm1 = vcmask 261120   ;;  %v371_v8 = vld [vmem:[#allocation8 + $0x10] sm:$0xff]   ;;  %v478_v23 = vmov 0  }
  0x3b   :  { %337 = vmatprep.subr.bf16.mxu1 %v476_v1  ;;  %353 = vmatprep.mubr.msk.bf16.mxu1 %vm477_vm0, %v476_v1  ;;  %v75_v6 = vpack.c.bf16 %v69_v4, %v69_v4  ;;  %v370_v7 = vld [vmem:[#allocation8 + $0x8] sm:$0xff]   ;;  %v372_v9 = vld [vmem:[#allocation8 + $0x18] sm:$0xff]   ;;  %v373_v10 = vld [vmem:[#allocation8 + $0x20] sm:$0xff]   ;;  %vm263_vm2 = vcmask 1043456   ;;  %v273_v37 = vshrl.u32 %v272_v36, 7  ;;  %v279_v40 = vand.u32 127, %v272_v36 }
  0x3c   :  { %330 = vmatpush3.bf16.msra.mxu0 %v367_v2  ;;  %338 = vmatpush3.bf16.msra.mxu1 %v369_v5  ;;  %v374_v11 = vld [vmem:[#allocation8 + $0x28] sm:$0xff]   ;;  %v375_v12 = vld [vmem:[#allocation8 + $0x30] sm:$0xff]   ;;  %v376_v13 = vld [vmem:[#allocation8 + $0x38] sm:$0xff]   ;;  %vm285_vm3 = vcmask 24576  }
  0x3d   :  { %331 = vmatprep.subr.bf16.mxu0 %v476_v1  ;;  %339 = vmatprep.subr.bf16.mxu1 %v476_v1  ;;  %v303_v14 = vld [vmem:[%s588_s2] ss:$0 sm:$0xff]  ;;  %v274_v39 = vsub.s32 0, %v273_v37  ;;  %v282_v42 = vsub.s32 %v279_v40, %v273_v37 }
  0x3e   :  { %366 = vset.pattern.permute.xlu0 %v478_v23  ;;  %v307_v24 = vld [vmem:[%s590_s4] ss:$0 sm:$0xff]  ;;  %s479_s4 = smov [#allocation9]  }
  0x3f   :  { %v316_v31 = vld [vmem:[%s591_s5] ss:$0 sm:$0xff]  ;;  %s293_s18 = sshll.u32 %s479_s4, 4  ;;  %s294_s18 = int_to_ptr.vmem [resolvable:$true] %s293_s18 }
  0x40   :  { %332 = vmatpush3.bf16.msra.mxu0 %v368_v3  ;;  %340 = vmatpush3.bf16.msra.mxu1 %v370_v7  ;;  %v255_v35 = vld [vmem:[#allocation2] sm:$0x1]  ;;  %s443_s5 = scalar_lea.vmem %s294_s18, 16  ;;  %s447_s19 = scalar_lea.vmem %s294_s18, 32 }
  0x41   :  { %341 = vmatprep.subr.bf16.mxu1 %v476_v1  ;;  %p444_p10 = scmp.ne.s32.totalorder %s294_s18, %s443_s5  ;;  %p448_p11 = scmp.lt.s32.totalorder %s294_s18, %s294_s18 }
  0x42   :  { %p449_p12 = scmp.lt.s32.totalorder %s447_s19, %s443_s5 }
  0x43   :  { %334 = vmatmul.mubr.msk.bf16.vlgmr.msra.gmra.mrb[0].mxu0 %vm94_vm1, %v75_v6 }
  0x44   :  { %342 = vmatpush3.bf16.msra.mxu1 %v371_v8  ;;  %p450_p13 = por %p449_p12, %p448_p11 }
  0x45   :  { %343 = vmatprep.subr.bf16.mxu1 %v476_v1 }
  0x46   :  { %p451_p0 = pnand %p450_p13, %p444_p10 }
  0x48   :  { %344 = vmatpush3.bf16.msra.mxu1 %v372_v9 }
  0x49   :  { %345 = vmatprep.subr.bf16.mxu1 %v476_v1 }
  0x4c   :  { %346 = vmatpush3.bf16.msra.mxu1 %v373_v10 }
  0x4d   :  { %347 = vmatprep.subr.bf16.mxu1 %v476_v1 }
  0x50   :  { %348 = vmatpush3.bf16.msra.mxu1 %v374_v11 }
  0x51   :  { %349 = vmatprep.subr.bf16.mxu1 %v476_v1 }
  0x54   :  { %350 = vmatpush3.bf16.msra.mxu1 %v375_v12 }
  0x55   :  { %351 = vmatprep.subr.bf16.mxu1 %v476_v1 }
  0x58   :  { %352 = vmatpush3.bf16.msra.mxu1 %v376_v13 }
 0x116   :  { %v132_v15 = vpop.f32.mrb[0].mxu0 }
 0x117   :  { %v133_v16 = vadd.f32 %v303_v14, %v132_v15  ;;  %v335_v17 = vpop.f32.mrb[1].mxu0 }
 0x118   :  { %v135_v18 = vpop.f32.mrb[2].mxu0 }
 0x119   :  { %v138_v19 = vmul.f32 0.2, %v133_v16  ;;  %v336_v20 = vpop.f32.mrb[3].mxu0 }
 0x11b   :  { %v139_v21 = vmax.f32 %v133_v16, %v138_v19 }
 0x11d   :  { %v157_v22 = vpack.c.bf16 %v139_v21, %v139_v21 }
 0x11f   :  { %354 = vmatmul.mubr.bf16.vlgmr.msra.gmra.mrb[0].mxu1 %v157_v22 }
 0x1f2   :  { %v246_v25 = vpop.f32.mrb[0].mxu1 }
 0x1f3   :  { %v247_v26 = vadd.f32 %v307_v24, %v246_v25  ;;  %v355_v27 = vpop.f32.mrb[1].mxu1 }
 0x1f4   :  { %v249_v28 = vpop.f32.mrb[2].mxu1 }
 0x1f5   :  { %v252_v29 = vmul.f32 0.2, %v247_v26  ;;  %v356_v30 = vpop.f32.mrb[3].mxu1 }
 0x1f7   :  { %v253_v32 = vmax.f32 %v247_v26, %v252_v29 }
 0x1f9   :  { %v262_v33 = vmul.f32 %v316_v31, %v253_v32 }
 0x1fb   :  { %v264_v34 = vsel %vm263_vm2, %v262_v33, 0.0 }
 0x1fc   :  { %265 = vadd.xlane.f32.xlu0 %v264_v34 }
 0x212   :  { %269 = vperm.xlu0 %366, %v255_v35  }
 0x289   :  { %v266_v38 = vpop.xlane.xlu0 %265 }
 0x291   :  { %v270_v41 = vpop.permute.xlu0 %269 }
 0x292   :  { %v275_v43 = vrot.slane %v270_v41, %v274_v39 }
 0x294   :  { %v276_v44 = vadd.f32 %v275_v43, %v266_v38 }
 0x296   :  { %v283_v45 = vrot.slane %v276_v44, %v282_v42 }
 0x298   :  { %286 = vst.msk [vmem:[#allocation9] sm:$0x1] %vm285_vm3, %v283_v45 }
 0x299   :  { %454 = shalt.err (!%p451_p0)
}
 0x29a   :  { %s455_s22 = scalar_lea.hbm %s593_s7, 16 }
 0x29b   :  { %p456_p1 = scmp.ne.s32.totalorder %s593_s7, %s455_s22  ;;  %p459_p2 = scmp.lt.u32.totalorder %s455_s22, %s593_s7 }
 0x29d   :  { %p461_p3 = pnand %p459_p2, %p456_p1 }
 0x29f   :  { %464 = shalt.err (!%p461_p3)
}
 0x2a0   :  { %296 = dma.vmem_to_hbm [thread:$0]  %s294_s18, 16, %s593_s7, [#allocation5]  }
 0x2a1   :  { %469 = dma.done.wait [#allocation5], 16  }
 0x2a2   :  { %470 = vsyncadd [#allocation5], 4294967280 }
 0x2a3   :  { %300 = vsyncpa [#allocation4], 1 }
 0x2a4   :  { %301 = vsyncpa [#allocation7], 1 }
 0x2a5   :  { %302 = vsyncpa [#allocation5], 1 }

</bundles_post_ra>
